<compile_context>
chip_gen: v7x
topology: tpu7x:2x2x1
jax: 0.10.0
libtpu: 0.0.40
codegen_flags: <defaults>
</compile_context>

<pallas_src>
import numpy as np
import jax
import jax.numpy as jnp
from jax.experimental import pallas as pl
from jax.experimental.pallas import tpu as pltpu

_LANE = 128
_TARGET_BLOCK_BYTES = 2 * 1024 * 1024   # per input stream per grid step
_MIN_GRID_STEPS = 4                     # keep both v7x TensorCores fed
_VMEM_LIMIT = 48 * 1024 * 1024          # < 64 MiB physical on v7x, << 128 MiB v5e/v6e


def _round_up(v, m):
    return ((v + m - 1) // m) * m


def _c_adj_kernel(x_ref, c_ref, o_ref):
    """out = sum_c x[c] * conj(csm[c]) on one lane-dense tile.

    Blocks are (C, T) float32 with re/im interleaved along the lane axis
    (lane 2k = Re of pixel k, lane 2k+1 = Im of pixel k).
    """
    x = x_ref[...]
    c = c_ref[...]
    T = x.shape[-1]

    lane = jax.lax.broadcasted_iota(jnp.int32, (1, T), 1)
    is_re = (lane & 1) == 0                  # even lanes hold the real part

    def pairswap(v):
        # Swap the two lanes of every (re, im) pair: even lane j <- v[j+1],
        # odd lane j <- v[j-1].  Rolls are XLU ops (free slack here); the cyclic
        # wrap only ever lands in lanes discarded by the parity select, and pairs
        # never straddle a block boundary (tile is a multiple of 128).
        nxt = pltpu.roll(v, T - 1, 1)        # nxt[j] = v[(j + 1) % T]
        prv = pltpu.roll(v, 1, 1)            # prv[j] = v[(j - 1) % T]
        return jnp.where(is_re, nxt, prv)

    # u[2k] = sum_c xr*cr , u[2k+1] = sum_c xi*ci      (coil reduce on sublanes)
    u = jnp.sum(x * c, axis=0, keepdims=True)
    # v[2k] = sum_c xi*cr , v[2k+1] = sum_c xr*ci
    v = jnp.sum(pairswap(x) * c, axis=0, keepdims=True)

    re = u + pairswap(u)          # y_re = xr*cr + xi*ci, replicated on both pair lanes
    im = pairswap(v) - v          # +y_im = xi*cr - xr*ci on imag lanes
    o_ref[...] = jnp.where(is_re, re, im)


def _choose_tile(C, L):
    """Lane tile: big enough to amortize per-step overhead, small enough for VMEM
    (including sublane padding of C), with >= _MIN_GRID_STEPS steps when possible."""
    pad_c = _round_up(max(C, 1), 8)              # sublane padding of the coil axis
    tile = max(_LANE, (_TARGET_BLOCK_BYTES // (pad_c * 4)) // _LANE * _LANE)
    l_ceil = _round_up(max(L, 1), _LANE)
    tile = min(tile, l_ceil)
    if l_ceil >= _MIN_GRID_STEPS * _LANE:
        tile = min(tile, _round_up(pl.cdiv(l_ceil, _MIN_GRID_STEPS), _LANE))
    return tile


def c_adj(x, csm):
    """Sensitivity adjoint: complex_mul(x, conj(csm)).sum(dim=0, keepdim=True).

    x, csm: (C, ..., 2) float32 with identical shapes.  Returns (1, ..., 2).
    """
    assert x.shape == csm.shape, "x and csm must have the same shape"
    assert x.shape[-1] == 2, "last axis must be (real, imag)"
    C = x.shape[0]
    spatial = x.shape[1:-1]
    P = int(np.prod(spatial)) if spatial else 1
    L = 2 * P                                    # interleaved re/im lanes

    # Free reshapes only: re/im stay interleaved along the last (lane) axis.
    x2 = x.reshape(C, L).astype(jnp.float32)
    c2 = csm.reshape(C, L).astype(jnp.float32)

    tile = _choose_tile(C, L)
    grid_n = pl.cdiv(L, tile)

    in_spec = pl.BlockSpec((C, tile), lambda i: (0, i))
    out_spec = pl.BlockSpec((1, tile), lambda i: (0, i))

    y = pl.pallas_call(
        _c_adj_kernel,
        out_shape=jax.ShapeDtypeStruct((1, L), jnp.float32),
        grid_spec=pltpu.PrefetchScalarGridSpec(
            num_scalar_prefetch=0,
            grid=(grid_n,),
            in_specs=[in_spec, in_spec],
            out_specs=out_spec,
        ),
        compiler_params=pltpu.CompilerParams(
            dimension_semantics=("parallel",),
            vmem_limit_bytes=_VMEM_LIMIT,
        ),
    )(x2, c2)

    return y.reshape(1, *spatial, 2)


def _c_adj_ref(x, csm):
    """Pure-JAX reference of C_adj for validation."""
    xc = x[..., 0] + 1j * x[..., 1]
    cc = csm[..., 0] + 1j * csm[..., 1]
    y = jnp.sum(xc * jnp.conj(cc), axis=0, keepdims=True)
    return jnp.stack([jnp.real(y), jnp.imag(y)], axis=-1).astype(jnp.float32)


if __name__ == "__main__":
    key = jax.random.PRNGKey(0)
    k1, k2 = jax.random.split(key)
    # coils=4, 16x16 image, real/imag pair
    x = jax.random.normal(k1, (4, 16, 16, 2), dtype=jnp.float32)
    csm = jax.random.normal(k2, (4, 16, 16, 2), dtype=jnp.float32)

    y = jax.block_until_ready(c_adj(x, csm))

    y_ref = _c_adj_ref(x, csm)
    err = float(jnp.max(jnp.abs(y - y_ref)))
    if err < 1e-4:  # pure f32 VPU arithmetic; only reassociation differences
        print("KERNEL_OK")
    else:
        print(f"MISMATCH max_abs_err={err}")
</pallas_src>

<mosaic_0001>
module attributes {stable_mosaic.version = 11 : i64} {
  func.func @_c_adj_kernel(%arg0: i32, %arg1: memref<4x128xf32, #tpu.memory_space<vmem>>, %arg2: memref<4x128xf32, #tpu.memory_space<vmem>>, %arg3: memref<1x128xf32, #tpu.memory_space<vmem>>) attributes {dimension_semantics = [#tpu.dimension_semantics<parallel>], iteration_bounds = array<i64: 4>, scalar_prefetch = 0 : i64, scratch_operands = 0 : i64, tpu.core_type = #tpu.core_type<tc>, window_params = [{transform_indices = @transform_0, window_bounds = array<i64: 4, 128>}, {transform_indices = @transform_1, window_bounds = array<i64: 4, 128>}, {transform_indices = @transform_2, window_bounds = array<i64: 1, 128>}]} {
    %c0 = arith.constant 0 : index
    %c0_0 = arith.constant 0 : index
    %0 = vector.load %arg1[%c0, %c0_0] : memref<4x128xf32, #tpu.memory_space<vmem>>, vector<4x128xf32>
    %c0_1 = arith.constant 0 : index
    %c0_2 = arith.constant 0 : index
    %1 = vector.load %arg2[%c0_1, %c0_2] : memref<4x128xf32, #tpu.memory_space<vmem>>, vector<4x128xf32>
    %2 = tpu.iota {dimensions = array<i32: 1>} : vector<1x128xi32>
    %c1_i32 = arith.constant 1 : i32
    %3 = vector.broadcast %c1_i32 : i32 to vector<1x128xi32>
    %4 = arith.andi %2, %3 : vector<1x128xi32>
    %c0_i32 = arith.constant 0 : i32
    %5 = vector.broadcast %c0_i32 : i32 to vector<1x128xi32>
    %6 = arith.cmpi eq, %4, %5 : vector<1x128xi32>
    %7 = arith.mulf %0, %1 : vector<4x128xf32>
    %cst = arith.constant dense<0.000000e+00> : vector<128xf32>
    %8 = vector.multi_reduction <add>, %7, %cst [0] : vector<4x128xf32> to vector<128xf32>
    %9 = vector.shape_cast %8 : vector<128xf32> to vector<1x128xf32>
    %c127_i32 = arith.constant 127 : i32
    %10 = tpu.dynamic_rotate %0 by %c127_i32 dim 1 : vector<4x128xf32>, i32 -> vector<4x128xf32>
    %c1_i32_3 = arith.constant 1 : i32
    %11 = tpu.dynamic_rotate %0 by %c1_i32_3 dim 1 : vector<4x128xf32>, i32 -> vector<4x128xf32>
    %12 = vector.shape_cast %6 : vector<1x128xi1> to vector<1x128xi1>
    %13 = vector.broadcast %12 : vector<1x128xi1> to vector<4x128xi1>
    %14 = arith.select %13, %10, %11 : vector<4x128xi1>, vector<4x128xf32>
    %15 = arith.mulf %14, %1 : vector<4x128xf32>
    %cst_4 = arith.constant dense<0.000000e+00> : vector<128xf32>
    %16 = vector.multi_reduction <add>, %15, %cst_4 [0] : vector<4x128xf32> to vector<128xf32>
    %17 = vector.shape_cast %16 : vector<128xf32> to vector<1x128xf32>
    %c127_i32_5 = arith.constant 127 : i32
    %18 = tpu.dynamic_rotate %9 by %c127_i32_5 dim 1 : vector<1x128xf32>, i32 -> vector<1x128xf32>
    %c1_i32_6 = arith.constant 1 : i32
    %19 = tpu.dynamic_rotate %9 by %c1_i32_6 dim 1 : vector<1x128xf32>, i32 -> vector<1x128xf32>
    %20 = arith.select %6, %18, %19 : vector<1x128xi1>, vector<1x128xf32>
    %21 = arith.addf %9, %20 : vector<1x128xf32>
    %c127_i32_7 = arith.constant 127 : i32
    %22 = tpu.dynamic_rotate %17 by %c127_i32_7 dim 1 : vector<1x128xf32>, i32 -> vector<1x128xf32>
    %c1_i32_8 = arith.constant 1 : i32
    %23 = tpu.dynamic_rotate %17 by %c1_i32_8 dim 1 : vector<1x128xf32>, i32 -> vector<1x128xf32>
    %24 = arith.select %6, %22, %23 : vector<1x128xi1>, vector<1x128xf32>
    %25 = arith.subf %24, %17 : vector<1x128xf32>
    %26 = arith.select %6, %21, %25 : vector<1x128xi1>, vector<1x128xf32>
    %c0_9 = arith.constant 0 : index
    %c0_10 = arith.constant 0 : index
    %27 = vector.load %arg3[%c0_9, %c0_10] : memref<1x128xf32, #tpu.memory_space<vmem>>, vector<1x128xf32>
    tpu.vector_store %arg3[%c0_9, %c0_10], %26 {strides = array<i32>} : memref<1x128xf32, #tpu.memory_space<vmem>>, vector<1x128xf32>,
    return
  }
  func.func @transform_0(%arg0: i32) -> (i32, i32) {
    %c0_i32 = arith.constant 0 : i32
    %c0_i32_0 = arith.constant 0 : i32
    return %c0_i32, %arg0 : i32, i32
  }
  func.func @transform_1(%arg0: i32) -> (i32, i32) {
    %c0_i32 = arith.constant 0 : i32
    %c0_i32_0 = arith.constant 0 : i32
    return %c0_i32, %arg0 : i32, i32
  }
  func.func @transform_2(%arg0: i32) -> (i32, i32) {
    %c0_i32 = arith.constant 0 : i32
    %c0_i32_0 = arith.constant 0 : i32
    return %c0_i32, %arg0 : i32, i32
  }
}

</mosaic_0001>

<bundles_post_ra>
// kernel: tpu_custom_call.1
= control target key start
LH: loop header
LB: loop body
LE: loop exit
PB: predicated region body
PF: predicated region fallthrough
CT: control target
= control target key end

     0   :  { %7 = vsyncpa [#allocation3], 0  ;;  %s781_s0 = inlined_call_operand.hbm [shape: f32[4,512], index: 0, kind: input, shape index: {}]   ;;  %s782_s1 = inlined_call_operand.hbm [shape: f32[4,512], index: 1, kind: input, shape index: {}]   ;;  %s783_s2 = inlined_call_operand.hbm [shape: f32[1,512], index: 2, kind: output, shape index: {}]  }
   0x1   :  { %9 = vsyncpa [#allocation3 + $0x1], 0 }
   0x2   :  { %10 = vsyncpa [#allocation6], 0 }
   0x3   :  { %12 = vsyncpa [#allocation6 + $0x1], 0 }
   0x4   :  { %13 = vsyncpa [#allocation4], 0 }
   0x5   :  { %15 = vsyncpa [#allocation4 + $0x1], 0  ;;  %s559_s9 = smov 0   ;;  %s561_s10 = smov 0  }
   0x6   :  { %s563_s11 = smov 0   ;;  %s565_s12 = smov 0  }
   0x7 LB: > { %s580_s13 = sadd.s32 4294967295, %s537_s12   ;;  %s341_s14 = sadd.s32 4294967294, %s537_s12   ;;  %s537_s12 = sphi %s565_s12, %s803_s12   ;;  %s533_s11 = sphi %s563_s11, %s802_s11   ;;  %s529_s10 = sphi %s561_s10, %s801_s10   ;;  %s525_s9 = sphi %s559_s9, %s800_s9  }
   0x8   : > { %s584_s15 = sadd.s32 1, %s537_s12   ;;  %s28_s16 = sadd.s32 1, %s533_s11 }
   0x9   : > { %s25_s17 = ssub.s32 %s537_s12, %s584_s15  ;;  %p35_p0 = scmp.ne.s32.totalorder %s533_s11, %s529_s10 }
   0xa   : > { %p26_p1 = scmp.eq.s32.totalorder %s25_s17, 0  ;;  %p36_p2 = scmp.eq.s32.totalorder %s537_s12, 0 }
   0xb   : > { %p41_p3 = scmp.ne.s32.totalorder %s529_s10, %s525_s9  ;;  %p42_p4 = scmp.eq.s32.totalorder %s580_s13, 0 }
   0xc   : > { %s596_s18 = scalar_select %p26_p1, %s533_s11, %s28_s16  }
   0xd   : > { %p598_p5 = por %p36_p2, %p35_p0  ;;  %p602_p6 = por %p42_p4, %p41_p3 }
   0xe   : > { %p91_p7 = scmp.eq.s32.totalorder %s580_s13, 3  ;;  %p97_p8 = scmp.eq.s32.totalorder %s341_s14, 3 }
   0xf   : > { %s787_s20 = scalar_select %p602_p6, 1, 0 }
  0x10   : > { %p371_p9 = scmp.lt.s32.totalorder %s537_s12, 4  ;;  %p608_p10 = por %p91_p7, %p35_p0 }
  0x11   : > { %p612_p11 = por %p97_p8, %p41_p3  ;;  %s617_s23 = sand.u32 1, %s533_s11  }
  0x12   : > { %s788_s21 = scalar_select %p608_p10, 1, 0 }
  0x13   : > { %s789_s22 = scalar_select %p612_p11, 1, 0 }
  0x14   : > { %s345_s24 = sshll.u32 %s537_s12, 6  ;;  %s344_s25 = sshll.u32 %s617_s23, 2 }
  0x15   : > { %s626_s28 = scalar_lea.hbm %s781_s0, %s345_s24  ;;  %s121_s29 = scalar_lea.vmem [#allocation2], %s344_s25 }
  0x16   : > { %s128_s30 = sshll.u32 %s121_s29, 4  ;;  %p632_p12 = pnand %p371_p9, %p598_p5  ;;  %s636_s30 = int_to_ptr.vmem [resolvable:$true] %s128_s30 }
  0x17   : > { %s118_s4 = scalar_lea.sflag [#allocation3], %s617_s23  ;;  %s407_s5 = scalar_lea.hbm %s626_s28, 64 }
  0x18   : > { %p408_p1 = scmp.ne.s32.totalorder %s626_s28, %s407_s5  ;;  %p409_p2 = pneg %p632_p12 }
  0x19   : > { %s412_s8 = scalar_lea.hbm %s781_s0, 256  ;;  %p413_p5 = scmp.lt.u32.totalorder %s626_s28, %s781_s0 }
  0x1a   : > { %p410_p3 = pnand %p409_p2, %p408_p1  ;;  %p414_p7 = scmp.lt.u32.totalorder %s412_s8, %s407_s5 }
  0x1b   : > { %p416_p9 = scmp.lt.u32.totalorder %s407_s5, %s626_s28 }
  0x1c   : > { %p411_p4 = pneg %p410_p3  ;;  %p415_p8 = por %p414_p7, %p413_p5 }
  0x1e   : > { %p417_p13 = por %p416_p9, %p415_p8 }
  0x20   : > { %p418_p0 = pnand %p417_p13, %p411_p4 }
  0x22   : > { %421 = shalt.err (!%p418_p0)
}
  0x23   : > { %s422_s17 = scalar_lea.vmem %s636_s30, 64  ;;  %s539_s19 = smov [#allocation2]  }
  0x24   : > { %p423_p1 = scmp.ne.s32.totalorder %s636_s30, %s422_s17  ;;  %s427_s26 = sshll.u32 %s539_s19, 4  ;;  %s428_s26 = int_to_ptr.vmem [resolvable:$false] %s427_s26 }
  0x25   : > { %s429_s27 = scalar_lea.vmem %s428_s26, 128  ;;  %p430_p10 = scmp.lt.s32.totalorder %s636_s30, %s428_s26 }
  0x26   : > { %p425_p3 = pnand %p423_p1, %p409_p2  ;;  %p431_p5 = scmp.lt.s32.totalorder %s429_s27, %s422_s17 }
  0x28   : > { %p426_p11 = pneg %p425_p3  ;;  %p432_p7 = por %p431_p5, %p430_p10 }
  0x2a   : > { %p433_p8 = pnand %p432_p7, %p426_p11 }
  0x2c   : > { %436 = shalt.err (!%p433_p8)
}
  0x2d   : > { %363 = dma.hbm_to_vmem [thread:$0]  (!%p632_p12), %s626_s28, 64, %s636_s30, %s118_s4  }
  0x2e   : > { %p791_p13 = scmp.lt.s32.totalorder %s537_s12, 5  ;;  %p792_p0 = scmp.ge.s32.totalorder %s537_s12, 1 }
  0x2f   : > { %s679_s7 = scalar_lea.hbm %s782_s1, %s345_s24  ;;  %s139_s8 = scalar_lea.vmem [#allocation5], %s344_s25 }
  0x30   : > { %p670_p4 = pnand %p792_p0, %p791_p13  ;;  %s146_s14 = sshll.u32 %s139_s8, 4  ;;  %s147_s14 = int_to_ptr.vmem [resolvable:$true] %s146_s14 }
  0x31   : > { %s136_s28 = scalar_lea.sflag [#allocation6], %s617_s23  ;;  %s437_s30 = scalar_lea.hbm %s679_s7, 64 }
  0x32   : > { %s793_s29 = scalar_select %p670_p4, 1, 0 }
  0x33   : > { %p438_p10 = scmp.ne.s32.totalorder %s679_s7, %s437_s30  ;;  %s442_s24 = scalar_lea.hbm %s782_s1, 256 }
  0x34   : > { %p443_p1 = scmp.lt.u32.totalorder %s679_s7, %s782_s1  ;;  %p444_p3 = scmp.lt.u32.totalorder %s442_s24, %s437_s30 }
  0x35   : > { %p440_p11 = pnand %p438_p10, %p409_p2  ;;  %p446_p7 = scmp.lt.u32.totalorder %s437_s30, %s679_s7 }
  0x36   : > { %p445_p5 = por %p444_p3, %p443_p1 }
  0x37   : > { %p441_p9 = pneg %p440_p11 }
  0x38   : > { %p447_p8 = por %p446_p7, %p445_p5 }
  0x3a   : > { %p448_p13 = pnand %p447_p8, %p441_p9 }
  0x3c   : > { %451 = shalt.err (!%p448_p13)
}
  0x3d   : > { %s452_s23 = scalar_lea.vmem %s147_s14, 64  ;;  %s540_s25 = smov [#allocation5]  }
  0x3e   : > { %p453_p0 = scmp.ne.s32.totalorder %s147_s14, %s452_s23  ;;  %s457_s26 = sshll.u32 %s540_s25, 4  ;;  %s458_s26 = int_to_ptr.vmem [resolvable:$false] %s457_s26 }
  0x3f   : > { %s459_s27 = scalar_lea.vmem %s458_s26, 128  ;;  %p460_p6 = scmp.lt.s32.totalorder %s147_s14, %s458_s26 }
  0x40   : > { %p455_p10 = pnand %p453_p0, %p409_p2  ;;  %p461_p4 = scmp.lt.s32.totalorder %s459_s27, %s452_s23 }
  0x42   : > { %p456_p11 = pneg %p455_p10  ;;  %p462_p1 = por %p461_p4, %p460_p6 }
  0x44   : > { %p463_p3 = pnand %p462_p1, %p456_p11 }
  0x46   : > { %466 = shalt.err (!%p463_p3)
}
  0x47   : > { %366 = dma.hbm_to_vmem [thread:$0]  (!%p632_p12), %s679_s7, 64, %s147_s14, %s136_s28  }
  0x48   : > { %p794_p9 = scmp.ne.s32.totalorder %s793_s29, 0 }
  0x49   : > { %s706_s5 = sand.u32 (!%p794_p9), 1, %s529_s10   ;;  %p795_p2 = scmp.ne.s32.totalorder (!%p794_p9), %s787_s20, 0 }
  0x4a   : > { %155 = sbr.rel (%p794_p9) target bundleno = 354 (0x162), region = 28  ;;  %s349_s6 = sshll.u32 (!%p794_p9), %s706_s5, 2 }
  0x4b   : > { %s158_s8 = scalar_lea.sflag (!%p794_p9), [#allocation3], %s706_s5  ;;  %s161_s30 = scalar_lea.vmem (!%p794_p9), [#allocation2], %s349_s6 }
  0x51   : > { %512 = dma.done.wait (%p795_p2), %s158_s8, 64  }
  0x52   : > { %514 = vsyncadd (%p795_p2), %s158_s8, 4294967232  ;;  %s167_s3 = scalar_lea.sflag [#allocation6], %s706_s5  ;;  %s170_s7 = scalar_lea.vmem [#allocation5], %s349_s6 }
  0x53   : > { %516 = dma.done.wait (%p795_p2), %s167_s3, 64  }
  0x54   : > { %518 = vsyncadd (%p795_p2), %s167_s3, 4294967232  ;;  %v195_v0 = vld [vmem:[%s161_s30] sm:$0xf]  ;;  %v196_v1 = vld [vmem:[%s170_s7] sm:$0xf]  ;;  %vm202_vm0 = vcmask 1043456   ;;  %v197_v10 = vlaneseq }
  0x55   : > { %s541_s29 = smov 127   ;;  %v201_v2 = vmul.f32 %v196_v1, %v195_v0  ;;  %s542_s14 = smov 1  }
  0x56   : > { %210 = vrot.lane.b32.xlu0 %v195_v0, %s541_s29  ;;  %v198_v11 = vand.u32 127, %v197_v10  ;;  %s351_s20 = sshll.u32 %s580_s13, 4  ;;  %s194_s28 = scalar_lea.vmem [#allocation7], %s706_s5 }
  0x57   : > { %v203_v3 = vsel %vm202_vm0, %v201_v2, 0.0  ;;  %s252_s4 = sshll.u32 %s194_s28, 4  ;;  %s736_s17 = scalar_lea.hbm %s783_s2, %s351_s20  ;;  %s738_s4 = int_to_ptr.vmem [resolvable:$true] %s252_s4 }
  0x58   : > { %v204_v4 = vrot.slane %v203_v3, 4  ;;  %v199_v12 = vand.u32 1, %v198_v11  ;;  %s240_s13 = scalar_lea.sflag [#allocation4], %s706_s5  ;;  %s467_s19 = scalar_lea.vmem %s738_s4, 16 }
  0x59   : > { %p468_p6 = scmp.ne.s32.totalorder %s738_s4, %s467_s19  ;;  %p798_p12 = scmp.ne.s32.totalorder %s788_s21, 0 }
  0x5a   : > { %212 = vrot.lane.b32.xlu0 %v195_v0, %s542_s14  ;;  %v205_v5 = vadd.f32 %v204_v4, %v203_v3  ;;  %vm720_vm1 = vcmp.eq.s32.totalorder %v199_v12, 0  ;;  %s543_s23 = smov [#allocation7]  }
  0x5b   : > { %p469_p4 = pnand %p468_p6, %p798_p12  ;;  %s471_s25 = sshll.u32 %s543_s23, 4  ;;  %s472_s25 = int_to_ptr.vmem [resolvable:$false] %s471_s25 }
  0x5c   : > { %v206_v6 = vrot.slane %v205_v5, 2  ;;  %s473_s26 = scalar_lea.vmem %s472_s25, 32  ;;  %p474_p7 = scmp.lt.s32.totalorder %s738_s4, %s472_s25 }
  0x5d   : > { %p470_p5 = pneg %p469_p4  ;;  %p475_p8 = scmp.lt.s32.totalorder %s473_s26, %s467_s19 }
  0x5e   : > { %v207_v7 = vadd.f32 %v206_v6, %v205_v5 }
  0x5f   : > { %p476_p13 = por %p475_p8, %p474_p7 }
  0x60   : > { %v208_v8 = vrot.slane %v207_v7, 1 }
  0x61   : > { %p477_p0 = pnand %p476_p13, %p470_p5 }
  0x62   : > { %v209_v9 = vadd.f32 %v208_v8, %v207_v7 }
  0x64   : > { %225 = vrot.lane.b32.xlu1 %v209_v9, %s541_s29 }
  0x68   : > { %227 = vrot.lane.b32.xlu1 %v209_v9, %s542_s14 }
  0xc8   : > { %v211_v13 = vpop.permute.xlu0 %210 }
  0xcc   : > { %v213_v15 = vpop.permute.xlu0 %212 }
  0xcd   : > { %v216_v16 = vsel %vm720_vm1, %v211_v13, %v213_v15 }
  0xce   : > { %v217_v17 = vmul.f32 %v216_v16, %v196_v1 }
  0xd0   : > { %v218_v18 = vsel %vm202_vm0, %v217_v17, 0.0 }
  0xd1   : > { %v219_v19 = vrot.slane %v218_v18, 4 }
  0xd3   : > { %v220_v20 = vadd.f32 %v219_v19, %v218_v18 }
  0xd5   : > { %v221_v21 = vrot.slane %v220_v20, 2 }
  0xd6   : > { %v226_v25 = vpop.permute.xlu1 %225 }
  0xd7   : > { %v222_v22 = vadd.f32 %v221_v21, %v220_v20 }
  0xd9   : > { %v223_v23 = vrot.slane %v222_v22, 1 }
  0xda   : > { %v228_v26 = vpop.permute.xlu1 %227 }
  0xdb   : > { %v224_v24 = vadd.f32 %v223_v23, %v222_v22  ;;  %v229_v27 = vsel %vm720_vm1, %v226_v25, %v228_v26 }
  0xdc   : > { %v230_v31 = vadd.f32 %v229_v27, %v209_v9 }
  0xdd   : > { %231 = vrot.lane.b32.xlu0 %v224_v24, %s541_s29  ;;  %233 = vrot.lane.b32.xlu1 %v224_v24, %s542_s14 }
 0x14f   : > { %v232_v28 = vpop.permute.xlu0 %231  ;;  %v234_v29 = vpop.permute.xlu1 %233 }
 0x150   : > { %v235_v30 = vsel %vm720_vm1, %v232_v28, %v234_v29 }
 0x151   : > { %v236_v32 = vsub.f32 %v235_v30, %v224_v24 }
 0x153   : > { %v237_v33 = vsel %vm720_vm1, %v230_v31, %v236_v32 }
 0x154   : > { %238 = vst [vmem:[%s194_s28] sm:$0x1] %v237_v33 }
 0x155   : > { %480 = shalt.err (!%p477_p0)
}
 0x156   : > { %s481_s27 = scalar_lea.hbm %s736_s17, 16  ;;  %s485_s8 = scalar_lea.hbm %s783_s2, 64 }
 0x157   : > { %p482_p10 = scmp.ne.s32.totalorder %s736_s17, %s481_s27  ;;  %p486_p3 = scmp.lt.u32.totalorder %s736_s17, %s783_s2 }
 0x158   : > { %p487_p9 = scmp.lt.u32.totalorder %s485_s8, %s481_s27  ;;  %p489_p6 = scmp.lt.u32.totalorder %s481_s27, %s736_s17 }
 0x159   : > { %p483_p11 = pnand %p482_p10, %p798_p12 }
 0x15a   : > { %p488_p2 = por %p487_p9, %p486_p3 }
 0x15b   : > { %p484_p1 = pneg %p483_p11 }
 0x15c   : > { %p490_p4 = por %p489_p6, %p488_p2 }
 0x15e   : > { %p491_p5 = pnand %p490_p4, %p484_p1 }
 0x160   : > { %494 = shalt.err (!%p491_p5)
}
 0x161   : > { %358 = dma.vmem_to_hbm [thread:$0]  (%p798_p12), %s738_s4, 16, %s736_s17, %s240_s13  }
 0x162 PF: > { %p372_p7 = scmp.ge.s32.totalorder %s537_s12, 2  ;;  %s264_s7 = sand.u32 1, %s525_s9  }
 0x163   : > { %p799_p8 = scmp.ne.s32.totalorder %s789_s22, 0  ;;  %s265_s29 = scalar_lea.sflag [#allocation4], %s264_s7 }
 0x165   : > { %p368_p13 = pnand %p372_p7, %p799_p8 }
 0x167   : > { %520 = dma.done.wait (!%p368_p13), %s265_s29, 16  }
 0x168   : > { %522 = vsyncadd (!%p368_p13), %s265_s29, 4294967280  ;;  %p18_p0 = scmp.ge.s32.totalorder %s584_s15, 6   ;;  %s800_s9 = smov %s529_s10 }
 0x169   : > { %s801_s10 = smov %s533_s11  ;;  %s802_s11 = smov %s596_s18 }
 0x16a   : > { %s803_s12 = smov %s584_s15  ;;  %20 = sbr.rel (!%p18_p0) target bundleno = 7 (0x7), region = 86 }
 0x171   :  { %269 = vsyncpa [#allocation3], 1 }
 0x172   :  { %271 = vsyncpa [#allocation3 + $0x1], 1 }
 0x173   :  { %272 = vsyncpa [#allocation6], 1 }
 0x174   :  { %274 = vsyncpa [#allocation6 + $0x1], 1 }
 0x175   :  { %275 = vsyncpa [#allocation4], 1 }
 0x176   :  { %277 = vsyncpa [#allocation4 + $0x1], 1 }

</bundles_post_ra>
